<compile_context>
chip_gen: v7x
topology: tpu7x:2x2x1
jax: 0.10.0
libtpu: 0.0.40
codegen_flags: <defaults>
</compile_context>

<pallas_src>
import functools
import math

import jax
import jax.numpy as jnp
from jax.experimental import pallas as pl
from jax.experimental.pallas import tpu as pltpu


def _sdpa_kernel(q_ref, k_ref, v_ref, mask_ref, ctx_ref, prob_ref, *,
                 scale, mxu_dtype, approx_recip):
    # Block shapes (batch/head dims squeezed out):
    #   q (TQ, D); k/v (Sk, D) already in mxu_dtype; mask (TQ or 1, Sk) int8;
    #   ctx (TQ, D); prob (TQ, Sk).
    # Softmax scale folded into Q: TQ*D multiplies instead of TQ*Sk.
    q = (q_ref[...] * scale).astype(mxu_dtype)

    # scores = (Q*scale) @ K^T — contraction over D, no explicit XLU transpose of K.
    scores = jax.lax.dot_general(
        q, k_ref[...],
        dimension_numbers=(((1,), (1,)), ((), ())),
        preferred_element_type=jnp.float32,
    )

    # masked_fill_(attn_mask, -1e9); mask may be (1, Sk) (broadcast) or (TQ, Sk).
    scores = jnp.where(mask_ref[...] != 0, jnp.float32(-1000000000.0), scores)

    # Numerically stable softmax over the key axis.
    m = jnp.max(scores, axis=-1, keepdims=True)
    e = jnp.exp(scores - m)
    denom = jnp.sum(e, axis=-1, keepdims=True)
    if approx_recip:
        prob = e * pl.reciprocal(denom, approx=True)   # EUP slot; fast (bf16) path only
    else:
        prob = e / denom                               # exact division on the f32 path

    # context = attn_prob @ V (narrow MXU operands, f32 accumulation).
    ctx = jnp.dot(prob.astype(mxu_dtype), v_ref[...],
                  preferred_element_type=jnp.float32)

    ctx_ref[...] = ctx.astype(ctx_ref.dtype)
    prob_ref[...] = prob.astype(prob_ref.dtype)


def _vmem_limit_bytes():
    """Generation-aware scoped-VMEM limit: ~75% of physical VMEM, capped at 100 MiB."""
    cap = None
    try:
        cap = int(pltpu.get_tpu_info().vmem_capacity_bytes)
    except Exception:
        cap = None
    if not cap:
        cap = 64 * 1024 * 1024  # conservative fallback (v7x-sized VMEM)
    return min((cap * 3) // 4, 100 * 1024 * 1024)


def _choose_query_tile(Sq, Sk, D, *, q_bytes, kv_bytes, mask_q, prob_bytes, ctx_bytes,
                       vmem_budget):
    """Largest query tile dividing Sq whose per-step working set fits the VMEM budget."""
    # TQ-independent footprint: double-buffered K and V blocks (full Sk resident per head).
    fixed = 2 * 2 * Sk * D * kv_bytes

    def cost(tq):
        c = fixed
        c += 2 * tq * D * q_bytes                      # Q in (double-buffered)
        c += 2 * (tq if mask_q else 1) * Sk            # int8 mask in
        c += 2 * tq * Sk * prob_bytes                  # prob out (double-buffered)
        c += 2 * tq * D * ctx_bytes                    # ctx out
        c += 3 * tq * Sk * 4                           # live f32 slabs (scores / exp / prob)
        c += 2 * tq * D * 4                            # live f32 context + headroom
        return c

    divisors = [t for t in (1024, 512, 256, 128, 64, 32) if t <= Sq and Sq % t == 0]
    for tq in divisors:
        if cost(tq) <= vmem_budget:
            return tq
    return divisors[-1] if divisors else Sq


def scaled_dot_product_attention(Q, K, V, attn_mask, *, use_bf16_matmul=True,
                                 prob_dtype=None):
    """Pallas TPU implementation of ScaledDotProductAttention.forward.

    Q: (B,H,Sq,D), K/V: (B,H,Sk,D); attn_mask: bool, broadcastable to (B,H,Sq,Sk)
    (True = masked out).  Returns (context, attn_prob).  attn_prob dtype defaults to
    Q.dtype (torch semantics); pass prob_dtype=jnp.bfloat16 to halve its HBM writeback
    (rows then sum to 1 only to bf16 precision).
    """
    B, H, Sq, D = Q.shape
    Sk = K.shape[2]
    scale = 1.0 / math.sqrt(D)

    out_dtype = jnp.dtype(Q.dtype)
    prob_dtype = jnp.dtype(out_dtype if prob_dtype is None else prob_dtype)

    # bf16 operands + f32 accumulation hit the v6e/v7x MXU fast path; the f32 path is
    # bit-tighter (and uses exact softmax division) but slower, especially on v5e.
    if use_bf16_matmul and out_dtype == jnp.float32:
        mxu_dtype = jnp.dtype(jnp.bfloat16)
    else:
        mxu_dtype = out_dtype
    approx_recip = mxu_dtype != jnp.float32

    # Ship K/V in the MXU operand dtype: halves their HBM read and (double-buffered)
    # VMEM footprint on the fast path and removes per-grid-step VPU casts of the
    # resident K/V block.  In a real model, produce K/V in bf16 upstream so this is a no-op.
    K_in = K if K.dtype == mxu_dtype else K.astype(mxu_dtype)
    V_in = V if V.dtype == mxu_dtype else V.astype(mxu_dtype)

    # Broadcastable mask: never materialize the full (B,H,Sq,Sk) expansion; the
    # index_map simply ignores dims of size 1.
    mask = attn_mask
    if mask.ndim < 4:
        mask = mask.reshape((1,) * (4 - mask.ndim) + mask.shape)
    Bm, Hm, Sqm, Skm = mask.shape
    if Skm != Sk or Sqm not in (1, Sq) or Bm not in (1, B) or Hm not in (1, H):
        raise ValueError(f"attn_mask shape {attn_mask.shape} is not broadcastable to "
                         f"{(B, H, Sq, Sk)}")
    mask_i8 = mask.astype(jnp.int8)  # 1 byte/elem; tiny when broadcast over batch/heads.

    vmem_limit = _vmem_limit_bytes()
    TQ = _choose_query_tile(
        Sq, Sk, D,
        q_bytes=out_dtype.itemsize,
        kv_bytes=mxu_dtype.itemsize,
        mask_q=(Sqm == Sq),
        prob_bytes=prob_dtype.itemsize,
        ctx_bytes=out_dtype.itemsize,
        vmem_budget=int(vmem_limit * 0.8),
    )
    n_q = Sq // TQ
    grid = (B, H, n_q)

    kernel = functools.partial(_sdpa_kernel, scale=scale, mxu_dtype=mxu_dtype,
                               approx_recip=approx_recip)

    q_spec = pl.BlockSpec((None, None, TQ, D), lambda b, h, qi: (b, h, qi, 0))
    # K/V index maps are invariant in qi -> each head's K/V block stays VMEM-resident
    # across the inner query-tile steps.  (For very long Sk on v7x's 64 MiB VMEM, a
    # key-axis tile + online softmax would be the next step; not needed at these sizes.)
    kv_spec = pl.BlockSpec((None, None, Sk, D), lambda b, h, qi: (b, h, 0, 0))

    def _mask_index_map(use_b, use_h, use_q):
        def idx(b, h, qi):
            return (b if use_b else 0, h if use_h else 0, qi if use_q else 0, 0)
        return idx

    mask_tq = TQ if Sqm == Sq else 1
    mask_spec = pl.BlockSpec((None, None, mask_tq, Sk),
                             _mask_index_map(Bm == B, Hm == H, Sqm == Sq))
    ctx_spec = pl.BlockSpec((None, None, TQ, D), lambda b, h, qi: (b, h, qi, 0))
    prob_spec = pl.BlockSpec((None, None, TQ, Sk), lambda b, h, qi: (b, h, qi, 0))

    cost = pl.CostEstimate(
        flops=4 * B * H * Sq * Sk * D,                         # QK^T + PV
        transcendentals=B * H * Sq * Sk,                       # exp
        bytes_accessed=(B * H * Sq * D * out_dtype.itemsize    # Q
                        + 2 * B * H * Sk * D * mxu_dtype.itemsize  # K, V
                        + Bm * Hm * Sqm * Sk * 1               # int8 mask (broadcast size)
                        + B * H * Sq * D * out_dtype.itemsize  # context
                        + B * H * Sq * Sk * prob_dtype.itemsize),  # attn_prob
    )

    ctx, prob = pl.pallas_call(
        kernel,
        out_shape=(
            jax.ShapeDtypeStruct((B, H, Sq, D), out_dtype),
            jax.ShapeDtypeStruct((B, H, Sq, Sk), prob_dtype),
        ),
        grid_spec=pltpu.PrefetchScalarGridSpec(
            num_scalar_prefetch=0,
            grid=grid,
            in_specs=[q_spec, kv_spec, kv_spec, mask_spec],
            out_specs=[ctx_spec, prob_spec],
        ),
        compiler_params=pltpu.CompilerParams(
            # All axes independent (no cross-step state), so the grid can shard
            # across v7x's 2 TensorCores.
            dimension_semantics=("parallel", "parallel", "parallel"),
            vmem_limit_bytes=vmem_limit,
        ),
        cost_estimate=cost,
    )(Q, K_in, V_in, mask_i8)
    return ctx, prob


def _reference(Q, K, V, attn_mask, d_head):
    scale = 1.0 / math.sqrt(d_head)
    scores = jnp.einsum("bhqd,bhkd->bhqk", Q, K) * scale
    scores = jnp.where(attn_mask, -1000000000.0, scores)
    prob = jax.nn.softmax(scores, axis=-1)
    ctx = jnp.einsum("bhqk,bhkd->bhqd", prob, V)
    return ctx, prob


if __name__ == "__main__":
    B, H, S, D = 2, 2, 8, 32  # batch, heads, seq, d_head

    key = jax.random.PRNGKey(0)
    kq, kk, kv = jax.random.split(key, 3)
    Q = jax.random.normal(kq, (B, H, S, D), dtype=jnp.float32)
    K = jax.random.normal(kk, (B, H, S, D), dtype=jnp.float32)
    V = jax.random.normal(kv, (B, H, S, D), dtype=jnp.float32)
    # Broadcastable causal-style mask (True = masked out), shared across batch/heads.
    attn_mask = jnp.triu(jnp.ones((S, S), dtype=bool), k=1)[None, None]

    ctx_ref, prob_ref = _reference(Q, K, V, attn_mask, D)

    # Default fast path: bf16 MXU operands + approx EUP reciprocal -> relaxed tolerances.
    ctx, prob = scaled_dot_product_attention(Q, K, V, attn_mask)
    jax.block_until_ready((ctx, prob))
    assert ctx.shape == (B, H, S, D) and prob.shape == (B, H, S, S)
    assert jnp.allclose(ctx, ctx_ref, atol=3e-2, rtol=3e-2), "context mismatch (bf16 path)"
    assert jnp.allclose(prob, prob_ref, atol=2e-2, rtol=2e-2), "attn_prob mismatch (bf16 path)"

    # Exact f32 path: f32 MXU operands + exact softmax division -> tight tolerances.
    ctx32, prob32 = scaled_dot_product_attention(Q, K, V, attn_mask, use_bf16_matmul=False)
    jax.block_until_ready((ctx32, prob32))
    assert jnp.allclose(ctx32, ctx_ref, atol=1e-3, rtol=1e-3), "context mismatch (f32 path)"
    assert jnp.allclose(prob32, prob_ref, atol=1e-3, rtol=1e-3), "attn_prob mismatch (f32 path)"

    # Low-traffic attn_prob writeback (bf16): rows sum to 1 only to bf16 precision.
    ctx_b, prob_b = scaled_dot_product_attention(Q, K, V, attn_mask, prob_dtype=jnp.bfloat16)
    jax.block_until_ready((ctx_b, prob_b))
    assert prob_b.dtype == jnp.bfloat16
    assert jnp.allclose(ctx_b, ctx_ref, atol=3e-2, rtol=3e-2), "context mismatch (bf16-prob path)"
    assert jnp.allclose(prob_b.astype(jnp.float32), prob_ref, atol=3e-2, rtol=3e-2), \
        "attn_prob mismatch (bf16-prob path)"

    print("KERNEL_OK")
</pallas_src>

<mosaic_0001>
module attributes {stable_mosaic.version = 11 : i64} {
  func.func @_sdpa_kernel(%arg0: i32, %arg1: i32, %arg2: i32, %arg3: memref<1x1x8x32xf32, #tpu.memory_space<vmem>>, %arg4: memref<1x1x8x32xbf16, #tpu.memory_space<vmem>>, %arg5: memref<1x1x8x32xbf16, #tpu.memory_space<vmem>>, %arg6: memref<1x1x8x8xi8, #tpu.memory_space<vmem>>, %arg7: memref<1x1x8x32xf32, #tpu.memory_space<vmem>>, %arg8: memref<1x1x8x8xf32, #tpu.memory_space<vmem>>) attributes {dimension_semantics = [#tpu.dimension_semantics<parallel>, #tpu.dimension_semantics<parallel>, #tpu.dimension_semantics<parallel>], iteration_bounds = array<i64: 2, 2, 1>, scalar_prefetch = 0 : i64, scratch_operands = 0 : i64, tpu.core_type = #tpu.core_type<tc>, window_params = [{transform_indices = @transform_0, window_bounds = array<i64: 1, 1, 8, 32>}, {transform_indices = @transform_1, window_bounds = array<i64: 1, 1, 8, 32>}, {transform_indices = @transform_2, window_bounds = array<i64: 1, 1, 8, 32>}, {transform_indices = @transform_3, window_bounds = array<i64: 1, 1, 8, 8>}, {transform_indices = @transform_4, window_bounds = array<i64: 1, 1, 8, 32>}, {transform_indices = @transform_5, window_bounds = array<i64: 1, 1, 8, 8>}]} {
    %c0 = arith.constant 0 : index
    %c0_0 = arith.constant 0 : index
    %c0_1 = arith.constant 0 : index
    %c0_2 = arith.constant 0 : index
    %0 = vector.load %arg3[%c0, %c0_0, %c0_1, %c0_2] : memref<1x1x8x32xf32, #tpu.memory_space<vmem>>, vector<1x1x8x32xf32>
    %1 = vector.shape_cast %0 : vector<1x1x8x32xf32> to vector<8x32xf32>
    %cst = arith.constant 0.176776692 : f32
    %2 = vector.broadcast %cst : f32 to vector<8x32xf32>
    %3 = arith.mulf %1, %2 : vector<8x32xf32>
    %4 = arith.truncf %3 : vector<8x32xf32> to vector<8x32xbf16>
    %c0_3 = arith.constant 0 : index
    %c0_4 = arith.constant 0 : index
    %c0_5 = arith.constant 0 : index
    %c0_6 = arith.constant 0 : index
    %5 = vector.load %arg4[%c0_3, %c0_4, %c0_5, %c0_6] : memref<1x1x8x32xbf16, #tpu.memory_space<vmem>>, vector<1x1x8x32xbf16>
    %6 = vector.shape_cast %5 : vector<1x1x8x32xbf16> to vector<8x32xbf16>
    %cst_7 = arith.constant dense<0.000000e+00> : vector<8x8xf32>
    %7 = tpu.matmul %4, %6, %cst_7 {dimension_numbers = #tpu.dot_dimension_numbers<[1], [1], [0], [0], [0, 0, 1, 0], [], []>} : vector<8x32xbf16>, vector<8x32xbf16>, vector<8x8xf32> -> vector<8x8xf32>
    %c0_8 = arith.constant 0 : index
    %c0_9 = arith.constant 0 : index
    %c0_10 = arith.constant 0 : index
    %c0_11 = arith.constant 0 : index
    %8 = vector.load %arg6[%c0_8, %c0_9, %c0_10, %c0_11] : memref<1x1x8x8xi8, #tpu.memory_space<vmem>>, vector<1x1x8x8xi8>
    %9 = vector.shape_cast %8 : vector<1x1x8x8xi8> to vector<8x8xi8>
    %c0_i8 = arith.constant 0 : i8
    %10 = vector.broadcast %c0_i8 : i8 to vector<8x8xi8>
    %11 = arith.cmpi ne, %9, %10 : vector<8x8xi8>
    %cst_12 = arith.constant -1.000000e+09 : f32
    %12 = vector.broadcast %cst_12 : f32 to vector<8x8xf32>
    %13 = arith.select %11, %12, %7 : vector<8x8xi1>, vector<8x8xf32>
    %cst_13 = arith.constant dense<0xFF800000> : vector<8xf32>
    %14 = vector.multi_reduction <maximumf>, %13, %cst_13 [1] : vector<8x8xf32> to vector<8xf32>
    %15 = vector.shape_cast %14 : vector<8xf32> to vector<8x1xf32>
    %16 = vector.broadcast %15 : vector<8x1xf32> to vector<8x8xf32>
    %17 = arith.subf %13, %16 : vector<8x8xf32>
    %18 = math.exp %17 : vector<8x8xf32>
    %cst_14 = arith.constant dense<0.000000e+00> : vector<8xf32>
    %19 = vector.multi_reduction <add>, %18, %cst_14 [1] : vector<8x8xf32> to vector<8xf32>
    %20 = vector.shape_cast %19 : vector<8xf32> to vector<8x1xf32>
    %21 = tpu.reciprocal %20 {approx = true} : vector<8x1xf32> -> vector<8x1xf32>
    %22 = vector.broadcast %21 : vector<8x1xf32> to vector<8x8xf32>
    %23 = arith.mulf %18, %22 : vector<8x8xf32>
    %24 = arith.truncf %23 : vector<8x8xf32> to vector<8x8xbf16>
    %c0_15 = arith.constant 0 : index
    %c0_16 = arith.constant 0 : index
    %c0_17 = arith.constant 0 : index
    %c0_18 = arith.constant 0 : index
    %25 = vector.load %arg5[%c0_15, %c0_16, %c0_17, %c0_18] : memref<1x1x8x32xbf16, #tpu.memory_space<vmem>>, vector<1x1x8x32xbf16>
    %26 = vector.shape_cast %25 : vector<1x1x8x32xbf16> to vector<8x32xbf16>
    %cst_19 = arith.constant dense<0.000000e+00> : vector<8x32xf32>
    %27 = tpu.matmul %24, %26, %cst_19 {dimension_numbers = #tpu.dot_dimension_numbers<[1], [0], [0], [1], [0, 0, 1, 1], [], []>} : vector<8x8xbf16>, vector<8x32xbf16>, vector<8x32xf32> -> vector<8x32xf32>
    %c0_20 = arith.constant 0 : index
    %c0_21 = arith.constant 0 : index
    %c0_22 = arith.constant 0 : index
    %c0_23 = arith.constant 0 : index
    %28 = vector.load %arg7[%c0_20, %c0_21, %c0_22, %c0_23] : memref<1x1x8x32xf32, #tpu.memory_space<vmem>>, vector<1x1x8x32xf32>
    %29 = vector.shape_cast %28 : vector<1x1x8x32xf32> to vector<8x32xf32>
    %30 = vector.shape_cast %27 : vector<8x32xf32> to vector<1x1x8x32xf32>
    tpu.vector_store %arg7[%c0_20, %c0_21, %c0_22, %c0_23], %30 {strides = array<i32>} : memref<1x1x8x32xf32, #tpu.memory_space<vmem>>, vector<1x1x8x32xf32>,
    %c0_24 = arith.constant 0 : index
    %c0_25 = arith.constant 0 : index
    %c0_26 = arith.constant 0 : index
    %c0_27 = arith.constant 0 : index
    %31 = vector.load %arg8[%c0_24, %c0_25, %c0_26, %c0_27] : memref<1x1x8x8xf32, #tpu.memory_space<vmem>>, vector<1x1x8x8xf32>
    %32 = vector.shape_cast %31 : vector<1x1x8x8xf32> to vector<8x8xf32>
    %33 = vector.shape_cast %23 : vector<8x8xf32> to vector<1x1x8x8xf32>
    tpu.vector_store %arg8[%c0_24, %c0_25, %c0_26, %c0_27], %33 {strides = array<i32>} : memref<1x1x8x8xf32, #tpu.memory_space<vmem>>, vector<1x1x8x8xf32>,
    return
  }
  func.func @transform_0(%arg0: i32, %arg1: i32, %arg2: i32) -> (i32, i32, i32, i32) {
    %c0_i32 = arith.constant 0 : i32
    %c0_i32_0 = arith.constant 0 : i32
    return %arg0, %arg1, %arg2, %c0_i32 : i32, i32, i32, i32
  }
  func.func @transform_1(%arg0: i32, %arg1: i32, %arg2: i32) -> (i32, i32, i32, i32) {
    %c0_i32 = arith.constant 0 : i32
    %c0_i32_0 = arith.constant 0 : i32
    %c0_i32_1 = arith.constant 0 : i32
    return %arg0, %arg1, %c0_i32, %c0_i32_0 : i32, i32, i32, i32
  }
  func.func @transform_2(%arg0: i32, %arg1: i32, %arg2: i32) -> (i32, i32, i32, i32) {
    %c0_i32 = arith.constant 0 : i32
    %c0_i32_0 = arith.constant 0 : i32
    %c0_i32_1 = arith.constant 0 : i32
    return %arg0, %arg1, %c0_i32, %c0_i32_0 : i32, i32, i32, i32
  }
  func.func @transform_3(%arg0: i32, %arg1: i32, %arg2: i32) -> (i32, i32, i32, i32) {
    %c0_i32 = arith.constant 0 : i32
    %c0_i32_0 = arith.constant 0 : i32
    %c0_i32_1 = arith.constant 0 : i32
    %c0_i32_2 = arith.constant 0 : i32
    return %c0_i32, %c0_i32_0, %arg2, %c0_i32_1 : i32, i32, i32, i32
  }
  func.func @transform_4(%arg0: i32, %arg1: i32, %arg2: i32) -> (i32, i32, i32, i32) {
    %c0_i32 = arith.constant 0 : i32
    %c0_i32_0 = arith.constant 0 : i32
    return %arg0, %arg1, %arg2, %c0_i32 : i32, i32, i32, i32
  }
  func.func @transform_5(%arg0: i32, %arg1: i32, %arg2: i32) -> (i32, i32, i32, i32) {
    %c0_i32 = arith.constant 0 : i32
    %c0_i32_0 = arith.constant 0 : i32
    return %arg0, %arg1, %arg2, %c0_i32 : i32, i32, i32, i32
  }
}

</mosaic_0001>

<bundles_post_ra>
// kernel: tpu_custom_call.1
= control target key start
LH: loop header
LB: loop body
LE: loop exit
PB: predicated region body
PF: predicated region fallthrough
CT: control target
= control target key end

     0   :  { %s1470_s0 = inlined_call_operand.hbm [shape: f32[2,2,8,32], index: 0, kind: input, shape index: {}]   ;;  %s1471_s1 = inlined_call_operand.hbm [shape: bf16[2,2,8,32], index: 1, kind: input, shape index: {}]   ;;  %s1472_s2 = inlined_call_operand.hbm [shape: bf16[2,2,8,32], index: 2, kind: input, shape index: {}]   ;;  %s1473_s3 = inlined_call_operand.vmem [shape: s8[1,1,8,8], index: 3, kind: input, shape index: {}]   ;;  %s1474_s4 = inlined_call_operand.hbm [shape: f32[2,2,8,32], index: 4, kind: output, shape index: {0}]   ;;  %s1475_s5 = inlined_call_operand.hbm [shape: f32[2,2,8,8], index: 5, kind: output, shape index: {1}]  }
   0x1   :  { %1486 = sst [smem:[#allocation23_spill]] %s1471_s1 }
   0x2   :  { %11 = vsyncpa [#allocation3], 0 }
   0x3   :  { %13 = vsyncpa [#allocation3 + $0x1], 0 }
   0x4   :  { %14 = vsyncpa [#allocation6], 0 }
   0x5   :  { %16 = vsyncpa [#allocation6 + $0x1], 0 }
   0x6   :  { %17 = vsyncpa [#allocation4], 0 }
   0x7   :  { %19 = vsyncpa [#allocation4 + $0x1], 0 }
   0x8   :  { %20 = vsyncpa [#allocation10], 0 }
   0x9   :  { %22 = vsyncpa [#allocation10 + $0x1], 0  ;;  %s1139_s18 = smov 0   ;;  %s1141_s19 = smov 0  }
   0xa   :  { %s1143_s20 = smov 0   ;;  %s1145_s21 = smov 0  }
   0xb   :  { %s1147_s22 = smov 0   ;;  %s1149_s23 = smov 0  }
   0xc   :  { %s1151_s24 = smov 0   ;;  %s1153_s25 = smov 0  }
   0xd LB: > { %1487 = sst [smem:[#allocation15_spill]] %s1071_s18  ;;  %s1180_s26 = sadd.s32 4294967295, %s1099_s25   ;;  %s1099_s25 = sphi %s1153_s25, %s28_s25   ;;  %s1095_s24 = sphi %s1151_s24, %s1515_s24   ;;  %s1091_s23 = sphi %s1149_s23, %s1514_s23   ;;  %s1087_s22 = sphi %s1147_s22, %s1513_s22   ;;  %s1083_s21 = sphi %s1145_s21, %s1512_s21   ;;  %s1079_s20 = sphi %s1143_s20, %s1511_s20   ;;  %s1075_s19 = sphi %s1141_s19, %s1517_s19   ;;  %s1071_s18 = sphi %s1139_s18, %s1516_s18  }
   0xe   : > { %1488 = sst [smem:[#allocation16_spill]] %s1079_s20  ;;  %s730_s27 = sadd.s32 4294967294, %s1099_s25  }
   0xf   : > { %1489 = sst [smem:[#allocation17_spill]] %s1091_s23  ;;  %s43_s28 = sadd.s32 1, %s1091_s23 }
  0x10   : > { %1490 = sst [smem:[#allocation18_spill]] %s1095_s24  ;;  %s47_s29 = sadd.s32 1, %s1095_s24 }
  0x11   : > { %p45_p0 = scmp.ge.s32.totalorder %s43_s28, 2  ;;  %s58_s30 = sadd.s32 1, %s1079_s20 }
  0x12   : > { %p65_p1 = scmp.ne.s32.totalorder %s1079_s20, %s1075_s19  ;;  %p66_p2 = scmp.eq.s32.totalorder %s1099_s25, 0 }
  0x13   : > { %s1519_s28 = smov (%p45_p0, %s43_s28), 0  ;;  %s1521_s29 = smov (!%p45_p0, %s47_s29), %s1095_s24 }
  0x14   : > { %1491 = sst [smem:[#allocation19_spill]] %s1519_s28  ;;  %s52_s6 = ssub.s32 %s1091_s23, %s1519_s28 }
  0x15   : > { %p1194_p3 = por %p66_p2, %p65_p1  ;;  %p49_p4 = scmp.ge.s32.totalorder %s1521_s29, 2 }
  0x16   : > { %p71_p5 = scmp.ne.s32.totalorder %s1075_s19, %s1071_s18  ;;  %p72_p6 = scmp.eq.s32.totalorder %s1180_s26, 0 }
  0x17   : > { %p181_p7 = scmp.eq.s32.totalorder %s1180_s26, 3  ;;  %s1523_s29 = smov (%p49_p4, %s1521_s29), 0 }
  0x18   : > { %1493 = sst [smem:[#allocation20_spill]] %s1523_s29  ;;  %p1204_p8 = por %p72_p6, %p71_p5 }
  0x19   : > { %p1208_p9 = por %p181_p7, %p65_p1  ;;  %s51_s10 = ssub.s32 %s1095_s24, %s1523_s29 }
  0x1a   : > { %s1494_s8 = scalar_select %p1204_p8, 1, 0 }
  0x1b   : > { %s1495_s9 = scalar_select %p1208_p9, 1, 0 }
  0x1c   : > { %p187_p10 = scmp.eq.s32.totalorder %s730_s27, 3  ;;  %s53_s11 = sor.u32 %s52_s6, %s51_s10 }
  0x1d   : > { %p56_p11 = scmp.eq.s32.totalorder %s53_s11, 0  ;;  %p802_p13 = scmp.lt.s32.totalorder %s1099_s25, 4 }
  0x1e   : > { %p1214_p12 = por %p187_p10, %p71_p5  ;;  %s1220_s13 = sand.u32 1, %s1079_s20  }
  0x1f   : > { %s1223_s14 = scalar_select %p56_p11, %s1079_s20, %s58_s30  }
  0x20   : > { %s1496_s12 = scalar_select %p1214_p12, 1, 0 }
  0x21   : > { %1498 = sst [smem:[#allocation22_spill]] %s1223_s14  ;;  %s735_s15 = sshll.u32 %s1095_s24, 1 }
  0x22   : > { %1497 = sst [smem:[#allocation21_spill]] %s1496_s12  ;;  %p1228_p0 = pnand %p802_p13, %p1194_p3 }
  0x23   : > { %s1233_s17 = sadd.s32 %s1091_s23, %s735_s15  ;;  %s265_s27 = sand.u32 1, %s1099_s25  }
  0x24   : > { %s1481_s6 = sshll.u32 %s1220_s13, 2  ;;  %s739_s10 = sshll.u32 %s1233_s17, 6 }
  0x25   : > { %s1500_s1 = sld [smem:[#allocation23_spill]]  ;;  %s269_s30 = scalar_lea.vmem [#allocation5], %s1481_s6 }
  0x26   : > { %s278_s7 = sshll.u32 %s269_s30, 4  ;;  %s1250_s23 = scalar_lea.hbm %s1472_s2, %s739_s10  ;;  %s1245_s7 = int_to_ptr.vmem [resolvable:$true] %s278_s7 }
  0x27   : > { %s1252_s14 = scalar_lea.sflag [#allocation6], %s265_s27  ;;  %p1258_p2 = pneg %p1228_p0 }
  0x2b   : > { %s1241_s28 = scalar_lea.hbm %s1500_s1, %s739_s10  ;;  %s880_s6 = scalar_lea.hbm %s1500_s1, 256 }
  0x2c   : > { %s875_s20 = scalar_lea.hbm %s1241_s28, 64  ;;  %p881_p5 = scmp.lt.u32.totalorder %s1241_s28, %s1500_s1 }
  0x2d   : > { %p876_p1 = scmp.ne.s32.totalorder %s1241_s28, %s875_s20  ;;  %p882_p6 = scmp.lt.u32.totalorder %s880_s6, %s875_s20 }
  0x2e   : > { %p884_p10 = scmp.lt.u32.totalorder %s875_s20, %s1241_s28 }
  0x2f   : > { %p878_p3 = pnand %p1258_p2, %p876_p1  ;;  %p883_p7 = por %p882_p6, %p881_p5 }
  0x31   : > { %p879_p4 = pneg %p878_p3  ;;  %p885_p11 = por %p884_p10, %p883_p7 }
  0x33   : > { %p886_p13 = pnand %p885_p11, %p879_p4 }
  0x35   : > { %889 = shalt.err (!%p886_p13)
}
  0x36   : > { %s890_s27 = scalar_lea.vmem %s1245_s7, 64  ;;  %s1101_s15 = smov [#allocation5]  }
  0x37   : > { %p891_p1 = scmp.ne.s32.totalorder %s1245_s7, %s890_s27  ;;  %s895_s11 = sshll.u32 %s1101_s15, 4  ;;  %s896_s11 = int_to_ptr.vmem [resolvable:$false] %s895_s11 }
  0x38   : > { %s897_s30 = scalar_lea.vmem %s896_s11, 128  ;;  %p898_p9 = scmp.lt.s32.totalorder %s1245_s7, %s896_s11 }
  0x39   : > { %p893_p3 = pnand %p891_p1, %p1258_p2  ;;  %p899_p8 = scmp.lt.s32.totalorder %s897_s30, %s890_s27 }
  0x3b   : > { %p894_p12 = pneg %p893_p3  ;;  %p900_p5 = por %p899_p8, %p898_p9 }
  0x3d   : > { %p901_p6 = pnand %p900_p5, %p894_p12 }
  0x3f   : > { %904 = shalt.err (!%p901_p6)
}
  0x40   : > { %791 = dma.hbm_to_vmem [thread:$0]  (!%p1228_p0), %s1241_s28, 64, %s1245_s7, %s1252_s14  }
  0x41   : > { %p743_p4 = scmp.ge.s32.totalorder %s1099_s25, 1  ;;  %p303_p7 = scmp.lt.s32.totalorder %s1099_s25, 5 }
  0x42   : > { %s734_s6 = sshll.u32 %s1220_s13, 3  ;;  %s736_s24 = sshll.u32 %s1233_s17, 7 }
  0x43   : > { %p1284_p10 = pnand %p743_p4, %p303_p7  ;;  %s1293_s15 = scalar_lea.hbm %s1470_s0, %s736_s24 }
  0x44   : > { %s248_s11 = scalar_lea.vmem [#allocation2], %s734_s6  ;;  %s1503_s7 = sshll.u32 %s1220_s13, 2 }
  0x45   : > { %s1502_s20 = scalar_select %p1284_p10, 1, 0 }
  0x46   : > { %s258_s28 = sshll.u32 %s248_s11, 4  ;;  %s289_s30 = scalar_lea.vmem [#allocation7], %s1503_s7  ;;  %s1297_s28 = int_to_ptr.vmem [resolvable:$true] %s258_s28 }
  0x47   : > { %s298_s1 = sshll.u32 %s289_s30, 4  ;;  %s245_s12 = scalar_lea.sflag [#allocation3], %s1220_s13  ;;  %s1299_s1 = int_to_ptr.vmem [resolvable:$true] %s298_s1 }
  0x48   : > { %s905_s17 = scalar_lea.hbm %s1293_s15, 128  ;;  %s910_s27 = scalar_lea.hbm %s1470_s0, 512 }
  0x49   : > { %p906_p8 = scmp.ne.s32.totalorder %s1293_s15, %s905_s17  ;;  %p911_p11 = scmp.lt.u32.totalorder %s1293_s15, %s1470_s0 }
  0x4a   : > { %p912_p13 = scmp.lt.u32.totalorder %s910_s27, %s905_s17  ;;  %p914_p3 = scmp.lt.u32.totalorder %s905_s17, %s1293_s15 }
  0x4b   : > { %p908_p9 = pnand %p906_p8, %p1258_p2 }
  0x4c   : > { %p913_p1 = por %p912_p13, %p911_p11 }
  0x4d   : > { %p909_p12 = pneg %p908_p9 }
  0x4e   : > { %p915_p5 = por %p914_p3, %p913_p1 }
  0x50   : > { %p916_p6 = pnand %p915_p5, %p909_p12 }
  0x52   : > { %919 = shalt.err (!%p916_p6)
}
  0x53   : > { %s920_s13 = scalar_lea.vmem %s1297_s28, 128  ;;  %s1102_s11 = smov [#allocation2]  }
  0x54   : > { %p921_p4 = scmp.ne.s32.totalorder %s1297_s28, %s920_s13  ;;  %s925_s7 = sshll.u32 %s1102_s11, 4  ;;  %s926_s7 = int_to_ptr.vmem [resolvable:$false] %s925_s7 }
  0x55   : > { %s927_s18 = scalar_lea.vmem %s926_s7, 256  ;;  %p928_p9 = scmp.lt.s32.totalorder %s1297_s28, %s926_s7 }
  0x56   : > { %p923_p7 = pnand %p921_p4, %p1258_p2  ;;  %p929_p10 = scmp.lt.s32.totalorder %s927_s18, %s920_s13 }
  0x58   : > { %p924_p8 = pneg %p923_p7  ;;  %p930_p11 = por %p929_p10, %p928_p9 }
  0x5a   : > { %p931_p13 = pnand %p930_p11, %p924_p8 }
  0x5c   : > { %934 = shalt.err (!%p931_p13)
}
  0x5d   : > { %788 = dma.hbm_to_vmem [thread:$0]  (!%p1228_p0), %s1293_s15, 128, %s1297_s28, %s245_s12  }
  0x5e   : > { %s935_s30 = scalar_lea.hbm %s1250_s23, 64  ;;  %s940_s10 = scalar_lea.hbm %s1472_s2, 256 }
  0x5f   : > { %p936_p12 = scmp.ne.s32.totalorder %s1250_s23, %s935_s30  ;;  %p941_p10 = scmp.lt.u32.totalorder %s1250_s23, %s1472_s2 }
  0x60   : > { %p942_p5 = scmp.lt.u32.totalorder %s940_s10, %s935_s30  ;;  %p944_p4 = scmp.lt.u32.totalorder %s935_s30, %s1250_s23 }
  0x61   : > { %p938_p1 = pnand %p936_p12, %p1258_p2 }
  0x62   : > { %p943_p6 = por %p942_p5, %p941_p10 }
  0x63   : > { %p939_p3 = pneg %p938_p1 }
  0x64   : > { %p945_p7 = por %p944_p4, %p943_p6 }
  0x66   : > { %p946_p8 = pnand %p945_p7, %p939_p3 }
  0x68   : > { %949 = shalt.err (!%p946_p8)
}
  0x69   : > { %s950_s12 = scalar_lea.vmem %s1299_s1, 64  ;;  %s1103_s15 = smov [#allocation7]  }
  0x6a   : > { %p951_p9 = scmp.ne.s32.totalorder %s1299_s1, %s950_s12  ;;  %s955_s28 = sshll.u32 %s1103_s15, 4  ;;  %s956_s28 = int_to_ptr.vmem [resolvable:$false] %s955_s28 }
  0x6b   : > { %s957_s13 = scalar_lea.vmem %s956_s28, 128  ;;  %p958_p12 = scmp.lt.s32.totalorder %s1299_s1, %s956_s28 }
  0x6c   : > { %p953_p11 = pnand %p951_p9, %p1258_p2  ;;  %p959_p1 = scmp.lt.s32.totalorder %s957_s13, %s950_s12 }
  0x6e   : > { %p954_p13 = pneg %p953_p11  ;;  %p960_p10 = por %p959_p1, %p958_p12 }
  0x70   : > { %p961_p5 = pnand %p960_p10, %p954_p13 }
  0x72   : > { %964 = shalt.err (!%p961_p5)
}
  0x73   : > { %794 = dma.hbm_to_vmem [thread:$0]  (!%p1228_p0), %s1250_s23, 64, %s1299_s1, %s1252_s14  }
  0x74   : > { %p1504_p3 = scmp.ne.s32.totalorder %s1502_s20, 0 }
  0x75   : > { %s1348_s29 = sand.u32 (!%p1504_p3), 1, %s1075_s19   ;;  %p1505_p2 = scmp.ne.s32.totalorder (!%p1504_p3), %s1494_s8, 0 }
  0x76   : > { %307 = sbr.rel (%p1504_p3) target bundleno = 895 (0x37f), region = 36  ;;  %s1351_s11 = sshll.u32 (!%p1504_p3), %s1348_s29, 3 }
  0x77   : > { %s310_s7 = scalar_lea.sflag (!%p1504_p3), [#allocation3], %s1348_s29  ;;  %s313_s18 = scalar_lea.vmem (!%p1504_p3), [#allocation2], %s1351_s11 }
  0x7d   : > { %1054 = dma.done.wait (%p1505_p2), %s310_s7, 128  }
  0x7e   : > { %1056 = vsyncadd (%p1505_p2), %s310_s7, 4294967168  ;;  %s318_s1 = sand.u32 1, %s1180_s26   ;;  %s745_s23 = sshll.u32 %s1348_s29, 2 }
  0x7f   : > { %s319_s14 = scalar_lea.sflag [#allocation6], %s318_s1  ;;  %s322_s16 = scalar_lea.vmem [#allocation5], %s745_s23 }
  0x80   : > { %1058 = dma.done.wait (%p1505_p2), %s319_s14, 128  }
  0x81   : > { %1060 = vsyncadd (%p1505_p2), %s319_s14, 4294967168  ;;  %v1104_v0 = vmov 0.0   ;;  %vm1105_vm0 = vmmov 0   ;;  %vm388_vm1 = vcmask 261120   ;;  %v387_v1 = vld [vmem:[%s322_s16] sm:$0xf] }
  0x82   : > { %763 = vmatprep.subr.bf16.mxu0 %v1104_v0  ;;  %765 = vmatprep.mubr.msk.bf16.mxu0 %vm1105_vm0, %v1104_v0  ;;  %v384_v2 = vld [vmem:[%s313_s18] sm:$0xff]  ;;  %v393_v3 = vsel %vm388_vm1, %v387_v1, 0  ;;  %v1106_v7 = vmov 0   ;;  %vm441_vm4 = vcmask 64512   ;;  %vm458_vm5 = vcmask 1043456   ;;  %s331_s8 = scalar_lea.vmem [#allocation7], %s745_s23 }
  0x83   : > { %769 = vmatprep.subr.bf16.mxu1 %v1104_v0  ;;  %771 = vmatprep.mubr.msk.bf16.mxu1 %vm1105_vm0, %v1104_v0  ;;  %v385_v4 = vmul.f32 0.17677669, %v384_v2  ;;  %v435_v6 = vld [vmem:[%s1473_s3] sm:$0x3]  ;;  %v454_v21 = vld [vmem:[%s331_s8] sm:$0xf] }
  0x84   : > { %764 = vmatpush3.bf16.xpose.msra.mxu0 %v393_v3  ;;  %vm436_vm2 = vnez %v435_v6  ;;  %v460_v22 = vsel %vm458_vm5, %v454_v21, 0  ;;  %s376_s30 = scalar_lea.vmem [#allocation9], %s1351_s11  ;;  %s753_s17 = sshll.u32 %s1087_s22, 1 }
  0x85   : > { %v386_v5 = vpack.c.bf16 %v385_v4, %v385_v4  ;;  %v437_v8 = vsel %vm436_vm2, 16843009, %v1106_v7  ;;  %770 = vmatpush3.bf16.msra.mxu1 %v460_v22  ;;  %s1381_s24 = sadd.s32 %s1083_s21, %s753_s17  ;;  %s542_s15 = sshll.u32 %s376_s30, 4  ;;  %s543_s15 = int_to_ptr.vmem [resolvable:$true] %s542_s15 }
  0x86   : > { %v438_v9 = vunpack.c.0.s8 %v437_v8  ;;  %s754_s10 = sshll.u32 %s1381_s24, 7  ;;  %s510_s28 = scalar_lea.sflag [#allocation10], %s1348_s29 }
  0x87   : > { %s1389_s12 = scalar_lea.hbm %s1475_s5, %s754_s10  ;;  %s965_s13 = scalar_lea.vmem %s543_s15, 128 }
  0x88   : > { %vm439_vm3 = vcmp.ne.s32.totalorder %v438_v9, 0  ;;  %p966_p0 = scmp.ne.s32.totalorder %s543_s15, %s965_s13  ;;  %p1506_p6 = scmp.ne.s32.totalorder %s1495_s9, 0 }
  0x89   : > { %s1107_s22 = smov [#allocation9]  }
  0x8a   : > { %p967_p4 = pnand %p966_p0, %p1506_p6  ;;  %s969_s21 = sshll.u32 %s1107_s22, 4  ;;  %s970_s21 = int_to_ptr.vmem [resolvable:$false] %s969_s21 }
  0x8b   : > { %766 = vmatmul.mubr.msk.bf16.vlgmr.msra.gmra.mrb[0].mxu0 %vm388_vm1, %v386_v5  ;;  %s971_s7 = scalar_lea.vmem %s970_s21, 256  ;;  %p972_p8 = scmp.lt.s32.totalorder %s543_s15, %s970_s21 }
  0x8c   : > { %p968_p7 = pneg %p967_p4  ;;  %p973_p9 = scmp.lt.s32.totalorder %s971_s7, %s965_s13 }
  0x8e   : > { %p974_p11 = por %p973_p9, %p972_p8 }
  0x90   : > { %p975_p13 = pnand %p974_p11, %p968_p7 }
 0x15e   : > { %v429_v10 = vpop.f32.mrb[0].mxu0 }
 0x15f   : > { %v440_v11 = vsel %vm439_vm3, -1e+09, %v429_v10  ;;  %v767_v12 = vpop.f32.mrb[1].mxu0 }
 0x160   : > { %v432_v13 = vpop.f32.mrb[2].mxu0  ;;  %v442_v14 = vsel %vm441_vm4, %v440_v11, -inf }
 0x161   : > { %443 = vmax.xlane.f32.xlu0 %v442_v14  ;;  %v768_v15 = vpop.f32.mrb[3].mxu0 }
 0x1ee   : > { %v444_v16 = vpop.xlane.xlu0 %443 }
 0x1ef   : > { %v445_v17 = vsub.f32 %v440_v11, %v444_v16 }
 0x1f1   : > { %v446_v18 = vmul.f32 1.442695, %v445_v17 }
 0x1f3   : > { %871 = vpow2.f32 %v446_v18 }
 0x1fd   : > { %v872_v19 = vpop.eup %871 }
 0x1fe   : > { %v448_v20 = vsel %vm441_vm4, %v872_v19, 0.0 }
 0x1ff   : > { %449 = vadd.xlane.f32.xlu0 %v448_v20 }
 0x28c   : > { %v450_v23 = vpop.xlane.xlu0 %449 }
 0x28d   : > { %873 = vrcp.f32 %v450_v23 }
 0x297   : > { %v874_v24 = vpop.eup %873 }
 0x298   : > { %v452_v25 = vmul.f32 %v874_v24, %v872_v19 }
 0x29a   : > { %v453_v26 = vpack.c.bf16 %v452_v25, %v452_v25  ;;  %503 = vst.msk [vmem:[%s376_s30] sm:$0xff] %vm441_vm4, %v452_v25 }
 0x29c   : > { %772 = vmatmul.mubr.msk.bf16.vlgmr.msra.gmra.mrb[0].mxu1 %vm441_vm4, %v453_v26 }
 0x29d   : > { %978 = shalt.err (!%p975_p13)
}
 0x29e   : > { %s979_s18 = scalar_lea.hbm %s1389_s12, 128  ;;  %s983_s14 = scalar_lea.hbm %s1475_s5, 512 }
 0x29f   : > { %p980_p12 = scmp.ne.s32.totalorder %s1389_s12, %s979_s18  ;;  %p984_p5 = scmp.lt.u32.totalorder %s1389_s12, %s1475_s5 }
 0x2a0   : > { %p985_p3 = scmp.lt.u32.totalorder %s983_s14, %s979_s18  ;;  %p987_p0 = scmp.lt.u32.totalorder %s979_s18, %s1389_s12 }
 0x2a1   : > { %p981_p1 = pnand %p980_p12, %p1506_p6 }
 0x2a2   : > { %p986_p2 = por %p985_p3, %p984_p5 }
 0x2a3   : > { %p982_p10 = pneg %p981_p1 }
 0x2a4   : > { %p988_p4 = por %p987_p0, %p986_p2 }
 0x2a6   : > { %p989_p7 = pnand %p988_p4, %p982_p10 }
 0x2a8   : > { %992 = shalt.err (!%p989_p7)
}
 0x2a9   : > { %782 = dma.vmem_to_hbm [thread:$0]  (%p1506_p6), %s543_s15, 128, %s1389_s12, %s510_s28  }
 0x2aa   : > { %s369_s20 = scalar_lea.vmem [#allocation8], %s1351_s11  ;;  %s1415_s27 = scalar_lea.hbm %s1474_s4, %s754_s10 }
 0x2ab   : > { %s526_s8 = sshll.u32 %s369_s20, 4  ;;  %s505_s6 = scalar_lea.sflag [#allocation4], %s1348_s29  ;;  %s1417_s8 = int_to_ptr.vmem [resolvable:$true] %s526_s8 }
 0x2ac   : > { %s993_s12 = scalar_lea.vmem %s1417_s8, 128  ;;  %s1108_s11 = smov [#allocation8]  }
 0x2ad   : > { %p994_p8 = scmp.ne.s32.totalorder %s1417_s8, %s993_s12  ;;  %s997_s24 = sshll.u32 %s1108_s11, 4  ;;  %s998_s24 = int_to_ptr.vmem [resolvable:$false] %s997_s24 }
 0x2ae   : > { %s999_s10 = scalar_lea.vmem %s998_s24, 256  ;;  %p1000_p13 = scmp.lt.s32.totalorder %s1417_s8, %s998_s24 }
 0x2af   : > { %p995_p9 = pnand %p994_p8, %p1506_p6  ;;  %p1001_p12 = scmp.lt.s32.totalorder %s999_s10, %s993_s12 }
 0x2b1   : > { %p996_p11 = pneg %p995_p9  ;;  %p1002_p1 = por %p1001_p12, %p1000_p13 }
 0x2b3   : > { %p1003_p10 = pnand %p1002_p1, %p996_p11 }
 0x36f   : > { %v496_v27 = vpop.f32.mrb[0].mxu1 }
 0x370   : > { %502 = vst.msk [vmem:[%s369_s20] sm:$0xff] %vm388_vm1, %v496_v27  ;;  %v773_v28 = vpop.f32.mrb[1].mxu1 }
 0x371   : > { %v499_v29 = vpop.f32.mrb[2].mxu1 }
 0x372   : > { %1006 = shalt.err (!%p1003_p10)
}
 0x373   : > { %s1007_s29 = scalar_lea.hbm %s1415_s27, 128  ;;  %s1011_s13 = scalar_lea.hbm %s1474_s4, 512 }
 0x374   : > { %p1008_p5 = scmp.ne.s32.totalorder %s1415_s27, %s1007_s29  ;;  %p1012_p0 = scmp.lt.u32.totalorder %s1415_s27, %s1474_s4 }
 0x375   : > { %p1013_p4 = scmp.lt.u32.totalorder %s1011_s13, %s1007_s29  ;;  %p1015_p8 = scmp.lt.u32.totalorder %s1007_s29, %s1415_s27 }
 0x376   : > { %p1009_p3 = pnand %p1008_p5, %p1506_p6 }
 0x377   : > { %p1014_p7 = por %p1013_p4, %p1012_p0 }
 0x378   : > { %p1010_p2 = pneg %p1009_p3 }
 0x379   : > { %p1016_p9 = por %p1015_p8, %p1014_p7 }
 0x37b   : > { %p1017_p11 = pnand %p1016_p9, %p1010_p2 }
 0x37d   : > { %1020 = shalt.err (!%p1017_p11)
}
 0x37e   : > { %781 = dma.vmem_to_hbm [thread:$0]  (%p1506_p6), %s1417_s8, 128, %s1415_s27, %s505_s6   ;;  %v774_v30 = vpop.f32.mrb[3].mxu1 }
 0x37f PF: > { %s1507_s7 = sld [smem:[#allocation15_spill]]  ;;  %s1508_s18 = sld [smem:[#allocation21_spill]] }
 0x380   : > { %p803_p13 = scmp.ge.s32.totalorder %s1099_s25, 2 }
 0x385   : > { %s554_s1 = sand.u32 1, %s1507_s7   ;;  %p1509_p12 = scmp.ne.s32.totalorder %s1508_s18, 0 }
 0x386   : > { %s555_s23 = scalar_lea.sflag [#allocation4], %s554_s1 }
 0x387   : > { %p796_p1 = pnand %p803_p13, %p1509_p12 }
 0x389   : > { %1062 = dma.done.wait (!%p796_p1), %s555_s23, 128  }
 0x38a   : > { %1064 = vsyncadd (!%p796_p1), %s555_s23, 4294967168  ;;  %s564_s14 = scalar_lea.sflag [#allocation10], %s554_s1 }
 0x38b   : > { %1066 = dma.done.wait (!%p796_p1), %s564_s14, 128  }
 0x38c   : > { %1068 = vsyncadd (!%p796_p1), %s564_s14, 4294967168  ;;  %s28_s25 = sadd.s32 1, %s1099_s25   ;;  %s1510_s9 = sld [smem:[#allocation16_spill]] }
 0x38d   : > { %p25_p10 = scmp.ge.s32.totalorder %s28_s25, 6   ;;  %s1511_s20 = sld [smem:[#allocation22_spill]] }
 0x38e   : > { %s1512_s21 = sld [smem:[#allocation17_spill]]  ;;  %s1513_s22 = sld [smem:[#allocation18_spill]] }
 0x38f   : > { %s1514_s23 = sld [smem:[#allocation19_spill]]  ;;  %s1515_s24 = sld [smem:[#allocation20_spill]] }
 0x390   : > { %s1516_s18 = smov %s1075_s19  ;;  %27 = sbr.rel (!%p25_p10) target bundleno = 13 (0xd), region = 125 }
 0x392   : > { %s1517_s19 = smov %s1510_s9 }
 0x397   :  { %569 = vsyncpa [#allocation3], 1 }
 0x398   :  { %571 = vsyncpa [#allocation3 + $0x1], 1 }
 0x399   :  { %572 = vsyncpa [#allocation6], 1 }
 0x39a   :  { %574 = vsyncpa [#allocation6 + $0x1], 1 }
 0x39b   :  { %575 = vsyncpa [#allocation4], 1 }
 0x39c   :  { %577 = vsyncpa [#allocation4 + $0x1], 1 }
 0x39d   :  { %578 = vsyncpa [#allocation10], 1 }
 0x39e   :  { %580 = vsyncpa [#allocation10 + $0x1], 1 }

</bundles_post_ra>
